<compile_context>
chip_gen: v7x
topology: tpu7x:2x2x1
jax: 0.10.0
libtpu: 0.0.40
codegen_flags: <defaults>
</compile_context>

<pallas_src>
import functools

import numpy as np
import jax
import jax.numpy as jnp
from jax.experimental import pallas as pl
from jax.experimental.pallas import tpu as pltpu


DTYPE = jnp.bfloat16  # activation dtype fed to the MXU


# ----------------------------- small helpers -----------------------------

def _rup(x, m):
    return ((x + m - 1) // m) * m


def _t3(v):
    if isinstance(v, (tuple, list)):
        return tuple(int(a) for a in v)
    return (int(v),) * 3


# ----------------------------- Pallas GEMM kernel -------------------------

def _mm_kernel(x_ref, w_ref, b_ref, *rest, relu, has_res):
    """K-tiled fused GEMM: acc += x@w; epilogue: +bias [+res] [ReLU]."""
    if has_res:
        r_ref, o_ref, acc_ref = rest
    else:
        r_ref = None
        o_ref, acc_ref = rest

    k = pl.program_id(2)

    @pl.when(k == 0)
    def _init():
        acc_ref[...] = jnp.zeros_like(acc_ref)

    acc_ref[...] += jnp.dot(x_ref[...], w_ref[...],
                            preferred_element_type=jnp.float32)

    @pl.when(k == pl.num_programs(2) - 1)
    def _finalize():
        y = acc_ref[...] + b_ref[...]
        if has_res:
            y = y + r_ref[...].astype(jnp.float32)
        if relu:
            y = jnp.maximum(y, 0.0)
        o_ref[...] = y.astype(o_ref.dtype)


def matmul_bias_act(x, wp, bp, n_out, *, relu, residual=None,
                    out_dtype=DTYPE):
    """y = act(x @ w + b [+ residual]).

    x:(M,K) any float dtype; wp:(Kp,Np) pre-padded bf16 weight;
    bp:(1,Np) pre-padded f32 bias; residual:(M,n_out) optional.
    """
    M, K = x.shape
    Kp, Np = wp.shape

    # M tiling: 128 rows, or the whole (16-rounded) extent for small M.
    if M >= 128:
        TM = 128
        Mp = _rup(M, TM)
    else:
        Mp = _rup(M, 16)
        TM = Mp
    # Lane-dense output tile (256 when the padded N allows it).
    TN = 256 if Np % 256 == 0 else 128
    # K reduction tile (pipelined over the weight stream).
    if Kp <= 512:
        TK = Kp
    else:
        TK = next(t for t in (512, 384, 256, 128) if Kp % t == 0)

    xp = jnp.pad(x.astype(jnp.bfloat16), ((0, Mp - M), (0, Kp - K)))

    operands = [xp, wp, bp]
    in_specs = [
        pl.BlockSpec((TM, TK), lambda i, j, k: (i, k)),
        pl.BlockSpec((TK, TN), lambda i, j, k: (k, j)),
        pl.BlockSpec((1, TN), lambda i, j, k: (0, j)),
    ]
    has_res = residual is not None
    if has_res:
        rp = jnp.pad(residual.astype(jnp.bfloat16),
                     ((0, Mp - M), (0, Np - n_out)))
        operands.append(rp)
        in_specs.append(pl.BlockSpec((TM, TN), lambda i, j, k: (i, j)))

    grid = (Mp // TM, Np // TN, Kp // TK)
    bytes_acc = (xp.size * 2 * (Np // TN)
                 + wp.size * 2 * (Mp // TM)
                 + Mp * Np * jnp.dtype(out_dtype).itemsize
                 + (Mp * Np * 2 if has_res else 0))

    out = pl.pallas_call(
        functools.partial(_mm_kernel, relu=relu, has_res=has_res),
        out_shape=jax.ShapeDtypeStruct((Mp, Np), out_dtype),
        grid=grid,
        in_specs=in_specs,
        out_specs=pl.BlockSpec((TM, TN), lambda i, j, k: (i, j)),
        scratch_shapes=[pltpu.VMEM((TM, TN), jnp.float32)],
        compiler_params=pltpu.CompilerParams(
            dimension_semantics=("parallel", "parallel", "arbitrary")),
        cost_estimate=pl.CostEstimate(flops=2 * Mp * Np * Kp,
                                      transcendentals=0,
                                      bytes_accessed=int(bytes_acc)),
    )(*operands)
    return out[:M, :n_out]


# ----------------------------- conv / pooling glue ------------------------

def _extract_patches(x, kernel, stride, pad):
    """im2col for NDHWC input (bf16).  Returns (B,Do,Ho,Wo, kd*kh*kw*C)."""
    kd, kh, kw = kernel
    sd, sh, sw = stride
    pd, ph, pw = pad
    x = jnp.pad(x, ((0, 0), (pd, pd), (ph, ph), (pw, pw), (0, 0)))
    B, D, H, W, C = x.shape
    Do = (D - kd) // sd + 1
    Ho = (H - kh) // sh + 1
    Wo = (W - kw) // sw + 1
    pieces = []
    for i in range(kd):
        for j in range(kh):
            for k in range(kw):
                sl = x[:, i::sd, j::sh, k::sw, :][:, :Do, :Ho, :Wo, :]
                pieces.append(sl)
    return jnp.concatenate(pieces, axis=-1), (Do, Ho, Wo)


def maxpool3d(x, kernel, stride, pad):
    kd, kh, kw = kernel
    sd, sh, sw = stride
    pd, ph, pw = pad
    init = jnp.array(-jnp.inf, dtype=x.dtype)
    return jax.lax.reduce_window(
        x, init, jax.lax.max,
        (1, kd, kh, kw, 1), (1, sd, sh, sw, 1),
        ((0, 0), (pd, pd), (ph, ph), (pw, pw), (0, 0)))


def adaptive_avg_pool3d(x, out=4):
    # PyTorch AdaptiveAvgPool3d semantics: bin i covers [floor(i*n/o), ceil((i+1)*n/o))
    x = x.astype(jnp.float32)
    for axis in (1, 2, 3):
        n = x.shape[axis]
        chunks = []
        for i in range(out):
            s = (i * n) // out
            e = -((-(i + 1) * n) // out)
            chunk = jax.lax.slice_in_dim(x, s, e, axis=axis)
            chunks.append(chunk.mean(axis=axis, keepdims=True))
        x = jnp.concatenate(chunks, axis=axis)
    return x


# ----------------------------- modules ------------------------------------

def conv3d_init(ps, cin, cout, kernel):
    kernel = _t3(kernel)
    K = kernel[0] * kernel[1] * kernel[2] * cin
    Kp, Np = _rup(K, 128), _rup(cout, 128)
    w = jax.random.normal(ps(), (K, cout), jnp.float32) * (1.0 / np.sqrt(K))
    b = jax.random.normal(ps(), (cout,), jnp.float32) * 0.01
    wp = jnp.pad(w, ((0, Kp - K), (0, Np - cout))).astype(jnp.bfloat16)
    bp = jnp.pad(b, (0, Np - cout)).reshape(1, Np)           # f32
    return {"w": wp, "b": bp, "kernel": kernel, "cin": cin, "cout": cout}


def conv3d_apply(p, x, stride=1, relu=True, residual=None, out_dtype=DTYPE):
    kd, kh, kw = p["kernel"]
    sd, sh, sw = _t3(stride)
    B = x.shape[0]
    if (kd, kh, kw) == (1, 1, 1):
        # 1x1x1 conv: no im2col at all; stride == subsampling.
        xs = x[:, ::sd, ::sh, ::sw, :]
        Do, Ho, Wo = xs.shape[1:4]
        feat = xs.reshape(B * Do * Ho * Wo, -1)
    else:
        pad = (kd // 2, kh // 2, kw // 2)   # autopad (padding=[None]*3)
        patches, (Do, Ho, Wo) = _extract_patches(
            x, (kd, kh, kw), (sd, sh, sw), pad)
        feat = patches.reshape(B * Do * Ho * Wo, -1)
    res = None
    if residual is not None:
        res = residual.reshape(B * Do * Ho * Wo, residual.shape[-1])
    y = matmul_bias_act(feat, p["w"], p["b"], p["cout"],
                        relu=relu, residual=res, out_dtype=out_dtype)
    return y.reshape(B, Do, Ho, Wo, p["cout"])


def linear_init(ps, cin, cout):
    Kp, Np = _rup(cin, 128), _rup(cout, 128)
    w = jax.random.normal(ps(), (cin, cout), jnp.float32) * (1.0 / np.sqrt(cin))
    b = jax.random.normal(ps(), (cout,), jnp.float32) * 0.01
    wp = jnp.pad(w, ((0, Kp - cin), (0, Np - cout))).astype(jnp.bfloat16)
    bp = jnp.pad(b, (0, Np - cout)).reshape(1, Np)
    return {"w": wp, "b": bp, "cout": cout}


def res1_init(ps, cin, cout, chid, kernel):
    return {
        "c1": conv3d_init(ps, cin, chid, kernel),
        "c2": conv3d_init(ps, chid, chid, (1, 3, 3)),
        "c3": conv3d_init(ps, chid, cout, 1),
    }


def res1_apply(p, x):
    h = conv3d_apply(p["c1"], x, 1, True)
    h = conv3d_apply(p["c2"], h, 1, True)
    # ReLU(x + c3(h)) fused into the c3 GEMM epilogue.
    return conv3d_apply(p["c3"], h, 1, relu=True, residual=x)


def res2_init(ps, cin, cout, chid, kernel):
    return {
        "c1": conv3d_init(ps, cin, chid, kernel),
        "c2": conv3d_init(ps, chid, chid, (1, 3, 3)),
        "c3": conv3d_init(ps, chid, cout, 1),
        "sc": conv3d_init(ps, cin, cout, 1),
    }


def res2_apply(p, x, stride):
    s = conv3d_apply(p["sc"], x, stride, relu=False)
    h = conv3d_apply(p["c1"], x, 1, True)
    h = conv3d_apply(p["c2"], h, stride, True)
    # ReLU(shortcut + c3(h)) fused into the c3 GEMM epilogue.
    return conv3d_apply(p["c3"], h, 1, relu=True, residual=s)


class KeyGen:
    def __init__(self, key):
        self.key = key
        self.count = 0

    def __call__(self):
        self.count += 1
        return jax.random.fold_in(self.key, self.count)


def init_slowfast(key, in_channel, nc=1000):
    ps = KeyGen(key)
    p = {}
    p["slow_conv0"] = conv3d_init(ps, in_channel, 64, (1, 7, 7))
    p["fast_conv0"] = conv3d_init(ps, in_channel, 8, (5, 7, 7))
    p["f2s0"] = conv3d_init(ps, 8, 16, (7, 1, 1))
    p["slow_res0"] = res2_init(ps, 80, 256, 64, 1)
    p["fast_res0"] = res2_init(ps, 8, 32, 8, (3, 1, 1))
    p["slow_res1"] = [res1_init(ps, 256, 256, 64, 1) for _ in range(2)]
    p["fast_res1"] = [res1_init(ps, 32, 32, 8, (3, 1, 1)) for _ in range(2)]
    p["f2s1"] = conv3d_init(ps, 32, 64, (7, 1, 1))
    p["slow_res2"] = res2_init(ps, 320, 512, 128, 1)
    p["fast_res2"] = res2_init(ps, 32, 64, 16, (3, 1, 1))
    p["slow_res3"] = [res1_init(ps, 512, 512, 128, 1) for _ in range(3)]
    p["fast_res3"] = [res1_init(ps, 64, 64, 16, (3, 1, 1)) for _ in range(3)]
    p["f2s2"] = conv3d_init(ps, 64, 128, (7, 1, 1))
    p["slow_res4"] = res2_init(ps, 640, 1024, 256, (3, 1, 1))
    p["fast_res4"] = res2_init(ps, 64, 128, 32, (3, 1, 1))
    p["slow_res5"] = [res1_init(ps, 1024, 1024, 256, (3, 1, 1)) for _ in range(5)]
    p["fast_res5"] = [res1_init(ps, 128, 128, 32, (3, 1, 1)) for _ in range(5)]
    p["f2s3"] = conv3d_init(ps, 128, 256, (7, 1, 1))
    p["slow_res6"] = res2_init(ps, 1280, 2048, 512, 1)
    p["fast_res6"] = res2_init(ps, 128, 256, 64, (3, 1, 1))
    p["slow_res7"] = [res1_init(ps, 2048, 2048, 512, (3, 1, 1)) for _ in range(2)]
    p["fast_res7"] = [res1_init(ps, 256, 256, 64, (3, 1, 1)) for _ in range(2)]
    p["head_conv"] = linear_init(ps, 2048 + 256, 2480)   # Conv1D(2304, 2480), k=1
    p["head_fc"] = linear_init(ps, 2480, nc)             # FullyConnected(2480, nc)
    return p


def slowfast_forward(p, x_ncdhw, time_keeper=4):
    # PyTorch input is NCDHW; convert to NDHWC bf16 for the kernels.
    x = jnp.transpose(x_ncdhw, (0, 2, 3, 4, 1)).astype(DTYPE)
    slow = x[:, ::time_keeper]
    fast = x

    # stems
    slow = conv3d_apply(p["slow_conv0"], slow, (1, 2, 2), True)
    slow = maxpool3d(slow, (1, 7, 7), (1, 2, 2), (0, 3, 3))
    fast = conv3d_apply(p["fast_conv0"], fast, (1, 2, 2), True)
    fast = maxpool3d(fast, (1, 3, 3), (1, 2, 2), (0, 1, 1))

    # stage 0 (reference concatenates [slow, f2s(fast)] here, [f2s, slow] later)
    slow = jnp.concatenate(
        [slow, conv3d_apply(p["f2s0"], fast, (4, 1, 1), True)], axis=-1)
    slow = res2_apply(p["slow_res0"], slow, 1)
    fast = res2_apply(p["fast_res0"], fast, 1)
    for blk in p["slow_res1"]:
        slow = res1_apply(blk, slow)
    for blk in p["fast_res1"]:
        fast = res1_apply(blk, fast)

    # stage 1
    slow = jnp.concatenate(
        [conv3d_apply(p["f2s1"], fast, (4, 1, 1), True), slow], axis=-1)
    slow = res2_apply(p["slow_res2"], slow, (1, 2, 2))
    fast = res2_apply(p["fast_res2"], fast, (1, 2, 2))
    for blk in p["slow_res3"]:
        slow = res1_apply(blk, slow)
    for blk in p["fast_res3"]:
        fast = res1_apply(blk, fast)

    # stage 2
    slow = jnp.concatenate(
        [conv3d_apply(p["f2s2"], fast, (4, 1, 1), True), slow], axis=-1)
    slow = res2_apply(p["slow_res4"], slow, (1, 2, 2))
    fast = res2_apply(p["fast_res4"], fast, (1, 2, 2))
    for blk in p["slow_res5"]:
        slow = res1_apply(blk, slow)
    for blk in p["fast_res5"]:
        fast = res1_apply(blk, fast)

    # stage 3
    slow = jnp.concatenate(
        [conv3d_apply(p["f2s3"], fast, (4, 1, 1), True), slow], axis=-1)
    slow = res2_apply(p["slow_res6"], slow, (1, 2, 2))
    fast = res2_apply(p["fast_res6"], fast, (1, 2, 2))
    for blk in p["slow_res7"]:
        slow = res1_apply(blk, slow)
    for blk in p["fast_res7"]:
        fast = res1_apply(blk, fast)

    # head
    slow = adaptive_avg_pool3d(slow, 4)   # (B,4,4,4,2048) f32
    fast = adaptive_avg_pool3d(fast, 4)   # (B,4,4,4,256)  f32
    out = jnp.concatenate([slow, fast], axis=-1)     # (B,4,4,4,2304)
    B = out.shape[0]
    C = out.shape[-1]
    out = out.reshape(B * 64, C)                     # 64 positions x channels
    # Conv1D(2304, 2480) with kernel 1 + ReLU == per-position linear.
    hc = p["head_conv"]
    out = matmul_bias_act(out, hc["w"], hc["b"], hc["cout"],
                          relu=True, out_dtype=jnp.float32)
    out = out.reshape(B, 64, -1).mean(axis=1)        # permute + mean over positions
    fc = p["head_fc"]
    out = matmul_bias_act(out, fc["w"], fc["b"], fc["cout"],
                          relu=False, out_dtype=jnp.float32)
    # export=False and not ONNX export -> no softmax.
    return out


# ----------------------------- main ---------------------------------------

if __name__ == "__main__":
    key = jax.random.PRNGKey(0)
    pkey, xkey = jax.random.split(key)

    B, IN_CHANNEL, T, S = 1, 3, 16, 32
    params = init_slowfast(pkey, IN_CHANNEL, nc=1000)
    x = jax.random.normal(xkey, (B, IN_CHANNEL, T, S, S), jnp.float32)  # NCDHW

    out = slowfast_forward(params, x, time_keeper=4)
    out = jax.block_until_ready(out)

    assert out.shape == (B, 1000), out.shape
    assert bool(jnp.all(jnp.isfinite(out)))
    print("KERNEL_OK")
</pallas_src>

<mosaic_0001>
module attributes {stable_mosaic.version = 11 : i64} {
  func.func @_mm_kernel(%arg0: i32, %arg1: i32, %arg2: i32, %arg3: memref<128x256xbf16, #tpu.memory_space<vmem>>, %arg4: memref<256x128xbf16, #tpu.memory_space<vmem>>, %arg5: memref<1x128xf32, #tpu.memory_space<vmem>>, %arg6: memref<128x128xbf16, #tpu.memory_space<vmem>>, %arg7: memref<128x128xf32, #tpu.memory_space<vmem>>) attributes {dimension_semantics = [#tpu.dimension_semantics<parallel>, #tpu.dimension_semantics<parallel>, #tpu.dimension_semantics<arbitrary>], iteration_bounds = array<i64: 8, 1, 1>, scalar_prefetch = 0 : i64, scratch_operands = 1 : i64, tpu.core_type = #tpu.core_type<tc>, window_params = [{transform_indices = @transform_0, window_bounds = array<i64: 128, 256>}, {transform_indices = @transform_1, window_bounds = array<i64: 256, 128>}, {transform_indices = @transform_2, window_bounds = array<i64: 1, 128>}, {transform_indices = @transform_3, window_bounds = array<i64: 128, 128>}]} {
    %c0_i32 = arith.constant 0 : i32
    %0 = arith.cmpi eq, %arg2, %c0_i32 : i32
    %1 = arith.extui %0 : i1 to i32
    %c0_i32_0 = arith.constant 0 : i32
    %2 = arith.cmpi ne, %1, %c0_i32_0 : i32
    scf.if %2 {
      %cst_10 = arith.constant 0.000000e+00 : f32
      %12 = vector.broadcast %cst_10 : f32 to vector<128x128xf32>
      %c0_11 = arith.constant 0 : index
      %c0_12 = arith.constant 0 : index
      %13 = vector.load %arg7[%c0_11, %c0_12] : memref<128x128xf32, #tpu.memory_space<vmem>>, vector<128x128xf32>
      tpu.vector_store %arg7[%c0_11, %c0_12], %12 {strides = array<i32>} : memref<128x128xf32, #tpu.memory_space<vmem>>, vector<128x128xf32>,
    } else {
    }
    %c0 = arith.constant 0 : index
    %c0_1 = arith.constant 0 : index
    %3 = vector.load %arg7[%c0, %c0_1] : memref<128x128xf32, #tpu.memory_space<vmem>>, vector<128x128xf32>
    %c0_2 = arith.constant 0 : index
    %c0_3 = arith.constant 0 : index
    %4 = vector.load %arg3[%c0_2, %c0_3] : memref<128x256xbf16, #tpu.memory_space<vmem>>, vector<128x256xbf16>
    %c0_4 = arith.constant 0 : index
    %c0_5 = arith.constant 0 : index
    %5 = vector.load %arg4[%c0_4, %c0_5] : memref<256x128xbf16, #tpu.memory_space<vmem>>, vector<256x128xbf16>
    %cst = arith.constant dense<0.000000e+00> : vector<128x128xf32>
    %6 = tpu.matmul %4, %5, %cst {dimension_numbers = #tpu.dot_dimension_numbers<[1], [0], [0], [1], [0, 0, 1, 1], [], []>} : vector<128x256xbf16>, vector<256x128xbf16>, vector<128x128xf32> -> vector<128x128xf32>
    %7 = arith.addf %3, %6 : vector<128x128xf32>
    %c0_6 = arith.constant 0 : index
    %c0_7 = arith.constant 0 : index
    %8 = vector.load %arg7[%c0_6, %c0_7] : memref<128x128xf32, #tpu.memory_space<vmem>>, vector<128x128xf32>
    tpu.vector_store %arg7[%c0_6, %c0_7], %7 {strides = array<i32>} : memref<128x128xf32, #tpu.memory_space<vmem>>, vector<128x128xf32>,
    %c0_i32_8 = arith.constant 0 : i32
    %9 = arith.cmpi eq, %arg2, %c0_i32_8 : i32
    %10 = arith.extui %9 : i1 to i32
    %c0_i32_9 = arith.constant 0 : i32
    %11 = arith.cmpi ne, %10, %c0_i32_9 : i32
    scf.if %11 {
      %c0_10 = arith.constant 0 : index
      %c0_11 = arith.constant 0 : index
      %12 = vector.load %arg7[%c0_10, %c0_11] : memref<128x128xf32, #tpu.memory_space<vmem>>, vector<128x128xf32>
      %c0_12 = arith.constant 0 : index
      %c0_13 = arith.constant 0 : index
      %13 = vector.load %arg5[%c0_12, %c0_13] : memref<1x128xf32, #tpu.memory_space<vmem>>, vector<1x128xf32>
      %14 = vector.broadcast %13 : vector<1x128xf32> to vector<128x128xf32>
      %15 = arith.addf %12, %14 : vector<128x128xf32>
      %cst_14 = arith.constant 0.000000e+00 : f32
      %16 = vector.broadcast %cst_14 : f32 to vector<128x128xf32>
      %17 = arith.maximumf %15, %16 : vector<128x128xf32>
      %18 = arith.truncf %17 : vector<128x128xf32> to vector<128x128xbf16>
      %c0_15 = arith.constant 0 : index
      %c0_16 = arith.constant 0 : index
      %19 = vector.load %arg6[%c0_15, %c0_16] : memref<128x128xbf16, #tpu.memory_space<vmem>>, vector<128x128xbf16>
      tpu.vector_store %arg6[%c0_15, %c0_16], %18 {strides = array<i32>} : memref<128x128xbf16, #tpu.memory_space<vmem>>, vector<128x128xbf16>,
    } else {
    }
    return
  }
  func.func @transform_0(%arg0: i32, %arg1: i32, %arg2: i32) -> (i32, i32) {
    %c0_i32 = arith.constant 0 : i32
    return %arg0, %arg2 : i32, i32
  }
  func.func @transform_1(%arg0: i32, %arg1: i32, %arg2: i32) -> (i32, i32) {
    %c0_i32 = arith.constant 0 : i32
    return %arg2, %arg1 : i32, i32
  }
  func.func @transform_2(%arg0: i32, %arg1: i32, %arg2: i32) -> (i32, i32) {
    %c0_i32 = arith.constant 0 : i32
    %c0_i32_0 = arith.constant 0 : i32
    return %c0_i32, %arg1 : i32, i32
  }
  func.func @transform_3(%arg0: i32, %arg1: i32, %arg2: i32) -> (i32, i32) {
    %c0_i32 = arith.constant 0 : i32
    return %arg0, %arg1 : i32, i32
  }
}

</mosaic_0001>

<bundles_post_ra>
// kernel: tpu_custom_call.1
= control target key start
LH: loop header
LB: loop body
LE: loop exit
PB: predicated region body
PF: predicated region fallthrough
CT: control target
= control target key end

     0   :  { %8 = vsyncpa [#allocation4], 0  ;;  %s1693_s0 = inlined_call_operand.hbm [shape: bf16[1024,256], index: 0, kind: input, shape index: {}]   ;;  %s1694_s1 = inlined_call_operand.hbm [shape: bf16[256,128], index: 1, kind: input, shape index: {}]   ;;  %s1695_s2 = inlined_call_operand.vmem [shape: f32[1,128], index: 2, kind: input, shape index: {}]   ;;  %s1696_s3 = inlined_call_operand.hbm [shape: bf16[1024,128], index: 3, kind: output, shape index: {}]  }
   0x1   :  { %10 = vsyncpa [#allocation4 + $0x1], 0 }
   0x2   :  { %11 = vsyncpa [#allocation7], 0 }
   0x3   :  { %12 = vsyncpa [#allocation5], 0 }
   0x4   :  { %14 = vsyncpa [#allocation5 + $0x1], 0  ;;  %s1425_s12 = smov 0   ;;  %s1427_s13 = smov 0  }
   0x5   :  { %s1429_s14 = smov 0   ;;  %s1431_s15 = smov 0  }
   0x6   :  { %s1433_s16 = smov 0   ;;  %s1435_s17 = smov 0  }
   0x7 LB: > { %s917_s18 = sadd.s32 4294967295, %s1394_s17   ;;  %s918_s19 = sadd.s32 4294967294, %s1394_s17   ;;  %s1394_s17 = sphi %s1435_s17, %s20_s17   ;;  %s1390_s16 = sphi %s1433_s16, %s1719_s16   ;;  %s1386_s15 = sphi %s1431_s15, %s1718_s15   ;;  %s1382_s14 = sphi %s1429_s14, %s1717_s14   ;;  %s1378_s13 = sphi %s1427_s13, %s1716_s13   ;;  %s1374_s12 = sphi %s1425_s12, %s1715_s12  }
   0x8   : > { %p61_p0 = scmp.ne.s32.totalorder %s1378_s13, %s1374_s12  ;;  %p1459_p1 = scmp.eq.s32.totalorder %s917_s18, 0 }
   0x9   : > { %p1463_p2 = scmp.eq.s32.totalorder %s917_s18, 7  ;;  %p147_p3 = scmp.eq.s32.totalorder %s918_s19, 7 }
   0xa   : > { %s1701_s20 = scalar_select %p1459_p1, 1, 0 }
   0xb   : > { %s1702_s21 = scalar_select %p1463_p2, 1, 0 }
   0xc   : > { %p1469_p4 = por %p1459_p1, %p61_p0  ;;  %p919_p5 = scmp.ge.s32.totalorder %s1394_s17, 1 }
   0xd   : > { %p1474_p6 = por %p147_p3, %p61_p0  ;;  %p154_p7 = scmp.lt.s32.totalorder %s1394_s17, 9 }
   0xe   : > { %s1703_s22 = scalar_select %p1469_p4, 1, 0 }
   0xf   : > { %s1704_s23 = scalar_select %p1474_p6, 1, 0 }
  0x10   : > { %p1479_p8 = pnand %p919_p5, %p154_p7  ;;  %s1396_s25 = smov [#allocation6]  }
  0x11   : > { %s170_s26 = sshll.u32 %s1396_s25, 4  ;;  %s39_s28 = sadd.s32 1, %s1390_s16  ;;  %s171_s26 = int_to_ptr.vmem [resolvable:$true] %s170_s26 }
  0x12   : > { %s1705_s24 = scalar_select %p1479_p8, 1, 0 }
  0x13   : > { %p1139_p9 = pneg %p1479_p8  ;;  %s1250_s4 = scalar_lea.hbm %s1694_s1, 2048 }
  0x14   : > { %p1251_p11 = scmp.ne.s32.totalorder %s1694_s1, %s1250_s4  ;;  %p1257_p3 = scmp.lt.u32.totalorder %s1250_s4, %s1694_s1 }
  0x15   : > { %p1487_p10 = pnand %p1139_p9, %p1459_p1 }
  0x17   : > { %p1252_p12 = pneg %p1487_p10 }
  0x19   : > { %p1253_p13 = pnand %p1252_p12, %p1251_p11 }
  0x1b   : > { %p1254_p0 = pneg %p1253_p13 }
  0x1d   : > { %p1259_p5 = pnand %p1257_p3, %p1254_p0 }
  0x1f   : > { %1262 = shalt.err (!%p1259_p5)
}
  0x20   : > { %s1263_s9 = scalar_lea.vmem %s171_s26, 2048  ;;  %p1271_p1 = scmp.lt.s32.totalorder %s171_s26, %s171_s26 }
  0x21   : > { %p1264_p7 = scmp.ne.s32.totalorder %s171_s26, %s1263_s9  ;;  %p1272_p4 = scmp.lt.s32.totalorder %s1263_s9, %s1263_s9 }
  0x23   : > { %p1266_p9 = pnand %p1264_p7, %p1252_p12  ;;  %p1273_p8 = por %p1272_p4, %p1271_p1 }
  0x25   : > { %p1267_p6 = pneg %p1266_p9 }
  0x27   : > { %p1274_p2 = pnand %p1273_p8, %p1267_p6 }
  0x29   : > { %1277 = shalt.err (!%p1274_p2)
}
  0x2a   : > { %s1397_s10 = smov 64   ;;  %s1398_s11 = smov 4  }
  0x2b   : > { %1142 = dma.hbm_to_vmem [thread:$0]  (!%p1487_p10), %s1694_s1, 2048, %s171_s26, [#allocation7], %s1397_s10, %s1397_s10, %s1398_s11  }
  0x2c   : > { %p41_p1 = scmp.ge.s32.totalorder %s39_s28, 8  ;;  %s48_s25 = sadd.s32 1, %s1382_s14 }
  0x2d   : > { %p55_p2 = scmp.ne.s32.totalorder %s1382_s14, %s1378_s13  ;;  %p56_p4 = scmp.eq.s32.totalorder %s1394_s17, 0 }
  0x2e   : > { %s1721_s28 = smov (%p41_p1, %s39_s28), 0  ;;  %p1708_p8 = scmp.ne.s32.totalorder %s1702_s21, 0 }
  0x2f   : > { %p1514_p6 = por %p56_p4, %p55_p2  ;;  %s43_s27 = ssub.s32 %s1390_s16, %s1721_s28 }
  0x30   : > { %p1520_p11 = por %p1708_p8, %p55_p2  ;;  %p1152_p12 = scmp.lt.s32.totalorder %s1394_s17, 8 }
  0x31   : > { %p46_p10 = scmp.eq.s32.totalorder %s43_s27, 0  ;;  %s190_s26 = sand.u32 1, %s1382_s14  }
  0x32   : > { %s923_s4 = sshll.u32 %s190_s26, 7  ;;  %s986_s6 = sshll.u32 %s1390_s16, 11 }
  0x33   : > { %s1529_s5 = scalar_select %p46_p10, %s1382_s14, %s48_s25  }
  0x34   : > { %s1535_s9 = scalar_lea.hbm %s1693_s0, %s986_s6  ;;  %s194_s21 = scalar_lea.vmem [#allocation3], %s923_s4 }
  0x35   : > { %s204_s10 = sshll.u32 %s194_s21, 4  ;;  %p1541_p13 = pnand %p1152_p12, %p1514_p6  ;;  %s1537_s10 = int_to_ptr.vmem [resolvable:$true] %s204_s10 }
  0x36   : > { %s1545_s18 = scalar_lea.sflag [#allocation4], %s190_s26  ;;  %s1278_s19 = scalar_lea.hbm %s1535_s9, 2048 }
  0x37   : > { %p1279_p0 = scmp.ne.s32.totalorder %s1535_s9, %s1278_s19  ;;  %p1280_p3 = pneg %p1541_p13 }
  0x38   : > { %s1283_s29 = scalar_lea.hbm %s1693_s0, 16384  ;;  %p1284_p9 = scmp.lt.u32.totalorder %s1535_s9, %s1693_s0 }
  0x39   : > { %p1281_p5 = pnand %p1280_p3, %p1279_p0  ;;  %p1285_p1 = scmp.lt.u32.totalorder %s1283_s29, %s1278_s19 }
  0x3a   : > { %p1287_p4 = scmp.lt.u32.totalorder %s1278_s19, %s1535_s9 }
  0x3b   : > { %p1282_p7 = pneg %p1281_p5  ;;  %p1286_p2 = por %p1285_p1, %p1284_p9 }
  0x3d   : > { %p1288_p6 = por %p1287_p4, %p1286_p2 }
  0x3f   : > { %p1289_p8 = pnand %p1288_p6, %p1282_p7 }
  0x41   : > { %1292 = shalt.err (!%p1289_p8)
}
  0x42   : > { %s1293_s26 = scalar_lea.vmem %s1537_s10, 2048  ;;  %s1399_s7 = smov [#allocation3]  }
  0x43   : > { %p1294_p12 = scmp.ne.s32.totalorder %s1537_s10, %s1293_s26  ;;  %s1298_s8 = sshll.u32 %s1399_s7, 4  ;;  %s1299_s8 = int_to_ptr.vmem [resolvable:$false] %s1298_s8 }
  0x44   : > { %s1300_s21 = scalar_lea.vmem %s1299_s8, 4096  ;;  %p1301_p5 = scmp.lt.s32.totalorder %s1537_s10, %s1299_s8 }
  0x45   : > { %p1296_p10 = pnand %p1294_p12, %p1280_p3  ;;  %p1302_p9 = scmp.lt.s32.totalorder %s1300_s21, %s1293_s26 }
  0x47   : > { %p1297_p0 = pneg %p1296_p10  ;;  %p1303_p1 = por %p1302_p9, %p1301_p5 }
  0x49   : > { %p1304_p2 = pnand %p1303_p1, %p1297_p0 }
  0x4b   : > { %1307 = shalt.err (!%p1304_p2)
}
  0x4c   : > { %s1400_s19 = smov 128   ;;  %s1401_s25 = smov 8  }
  0x4d   : > { %1146 = dma.hbm_to_vmem [thread:$0]  (!%p1541_p13), %s1535_s9, 2048, %s1537_s10, %s1545_s18, %s1400_s19, %s1400_s19, %s1401_s25  }
  0x4e   : > { %p1711_p3 = scmp.ne.s32.totalorder %s1705_s24, 0 }
  0x4f   : > { %s1576_s27 = sand.u32 (!%p1711_p3), 1, %s1378_s13   ;;  %p1712_p7 = scmp.ne.s32.totalorder (!%p1711_p3), %s1703_s22, 0 }
  0x50   : > { %216 = sbr.rel (%p1711_p3) target bundleno = 387 (0x183), region = 32  ;;  %s928_s29 = sshll.u32 (!%p1711_p3), %s1576_s27, 7 }
  0x51   : > { %s219_s4 = scalar_lea.sflag (!%p1711_p3), [#allocation4], %s1576_s27  ;;  %s1580_s6 = scalar_lea.vmem (!%p1711_p3), [#allocation3], %s928_s29 }
  0x57   : > { %1361 = dma.done.wait (%p1712_p7), %s219_s4, 2048  }
  0x58   : > { %1363 = vsyncadd (%p1712_p7), %s219_s4, 4294965248  ;;  %p1713_p13 = scmp.ne.s32.totalorder %s1701_s20, 0 }
  0x5a   : > { %1365 = dma.done.wait (%p1713_p13), [#allocation7], 2048  }
  0x5b   : > { %1367 = vsyncadd (%p1713_p13), [#allocation7], 4294965248  ;;  %v1210_v0 = vld [vmem:[#allocation6 + $0x40] sm:$0xff]   ;;  %v1212_v2 = vld [vmem:[#allocation6 + $0x48] sm:$0xff]   ;;  %s930_s24 = sshll.u32 %s1576_s27, 6  ;;  %s1003_s10 = sshll.u32 %s1386_s15, 10 }
  0x5c   : > { %v1211_v1 = vld [vmem:[#allocation6] sm:$0xff]   ;;  %1051 = vmatprep.subr.bf16.mxu0 %v1210_v0  ;;  %1115 = vmatprep.subr.bf16.mxu1 %v1210_v0  ;;  %v1213_v3 = vld [vmem:[#allocation6 + $0x8] sm:$0xff]   ;;  %v1214_v4 = vld [vmem:[#allocation6 + $0x50] sm:$0xff]   ;;  %s1616_s9 = scalar_lea.vmem [#allocation8], %s930_s24  ;;  %s1641_s7 = scalar_lea.hbm %s1696_s3, %s1003_s10 }
  0x5d   : > { %1052 = vmatpush3.bf16.msra.mxu0 %v1211_v1  ;;  %1123 = vmatpush3.bf16.msra.mxu1 %v1211_v1  ;;  %v1215_v5 = vld [vmem:[#allocation6 + $0x10] sm:$0xff]   ;;  %v1216_v6 = vld [vmem:[#allocation6 + $0x58] sm:$0xff]   ;;  %v1218_v8 = vld [vmem:[#allocation6 + $0x60] sm:$0xff]   ;;  %s802_s11 = sshll.u32 %s1616_s9, 4  ;;  %s788_s15 = scalar_lea.sflag [#allocation5], %s1576_s27  ;;  %s1643_s11 = int_to_ptr.vmem [resolvable:$true] %s802_s11 }
  0x5e   : > { %1053 = vmatprep.subr.bf16.mxu0 %v1212_v2  ;;  %1116 = vmatprep.subr.bf16.mxu1 %v1212_v2  ;;  %v1217_v7 = vld [vmem:[#allocation6 + $0x18] sm:$0xff]   ;;  %v1219_v9 = vld [vmem:[#allocation6 + $0x20] sm:$0xff]   ;;  %v1220_v10 = vld [vmem:[#allocation6 + $0x68] sm:$0xff]   ;;  %s1308_s8 = scalar_lea.vmem %s1643_s11, 1024  ;;  %s1402_s21 = smov [#allocation8]  }
  0x5f   : > { %v1228_v11 = vld [vmem:[%s1580_s6 + $0x4] ss:$8 sps:$4 sm:$0xff]   ;;  %v1222_v14 = vld [vmem:[#allocation6 + $0x70] sm:$0xff]   ;;  %v1224_v16 = vld [vmem:[#allocation6 + $0x78] sm:$0xff]   ;;  %p1309_p4 = scmp.ne.s32.totalorder %s1643_s11, %s1308_s8  ;;  %s1312_s19 = sshll.u32 %s1402_s21, 4  ;;  %s1313_s19 = int_to_ptr.vmem [resolvable:$false] %s1312_s19 }
  0x60   : > { %v1231_v12 = vld [vmem:[%s1580_s6 + $0x44] ss:$8 sps:$4 sm:$0xff]   ;;  %552 = vmatprep.mubr.bf16.mxu0 %v1228_v11  ;;  %v1223_v15 = vld [vmem:[#allocation6 + $0x30] sm:$0xff]   ;;  %v1225_v17 = vld [vmem:[#allocation6 + $0x38] sm:$0xff]   ;;  %s1314_s25 = scalar_lea.vmem %s1313_s19, 2048  ;;  %p1315_p12 = scmp.lt.s32.totalorder %s1643_s11, %s1313_s19 }
  0x61   : > { %1054 = vmatpush3.bf16.msra.mxu0 %v1213_v3  ;;  %1124 = vmatpush3.bf16.msra.mxu1 %v1213_v3  ;;  %v1221_v13 = vld [vmem:[#allocation6 + $0x28] sm:$0xff]   ;;  %v1232_v20 = vld [vmem:[%s1580_s6 + $0x14] ss:$8 sps:$4 sm:$0xff]   ;;  %v1236_v22 = vld [vmem:[%s1580_s6 + $0x10] ss:$8 sps:$4 sm:$0xff]   ;;  %p1310_p6 = pnand %p1309_p4, %p1520_p11  ;;  %p1316_p10 = scmp.lt.s32.totalorder %s1314_s25, %s1308_s8 }
  0x62   : > { %1055 = vmatprep.subr.bf16.mxu0 %v1214_v4  ;;  %1117 = vmatprep.subr.bf16.mxu1 %v1214_v4  ;;  %v1226_v18 = vld [vmem:[%s1580_s6] ss:$8 sps:$4 sm:$0xff]   ;;  %v1234_v21 = vld [vmem:[%s1580_s6 + $0x54] ss:$8 sps:$4 sm:$0xff]   ;;  %v1237_v23 = vld [vmem:[%s1580_s6 + $0x50] ss:$8 sps:$4 sm:$0xff]  }
  0x63   : > { %584 = vmatprep.mubr.bf16.mxu1 %v1231_v12  ;;  %v1229_v19 = vld [vmem:[%s1580_s6 + $0x40] ss:$8 sps:$4 sm:$0xff]   ;;  %v1238_v24 = vld [vmem:[%s1580_s6 + $0x24] ss:$8 sps:$4 sm:$0xff]   ;;  %v1244_v28 = vld [vmem:[%s1580_s6 + $0x34] ss:$8 sps:$4 sm:$0xff]   ;;  %p1311_p8 = pneg %p1310_p6  ;;  %p1317_p0 = por %p1316_p10, %p1315_p12 }
  0x64   : > { %v1240_v25 = vld [vmem:[%s1580_s6 + $0x64] ss:$8 sps:$4 sm:$0xff]   ;;  %v1242_v26 = vld [vmem:[%s1580_s6 + $0x20] ss:$8 sps:$4 sm:$0xff]   ;;  %v1246_v29 = vld [vmem:[%s1580_s6 + $0x74] ss:$8 sps:$4 sm:$0xff]  }
  0x65   : > { %1056 = vmatpush3.bf16.msra.mxu0 %v1215_v5  ;;  %1125 = vmatpush3.bf16.msra.mxu1 %v1215_v5  ;;  %v1243_v27 = vld [vmem:[%s1580_s6 + $0x60] ss:$8 sps:$4 sm:$0xff]   ;;  %v1248_v30 = vld [vmem:[%s1580_s6 + $0x30] ss:$8 sps:$4 sm:$0xff]   ;;  %p1318_p5 = pnand %p1317_p0, %p1311_p8 }
  0x66   : > { %1057 = vmatprep.subr.bf16.mxu0 %v1216_v6  ;;  %1118 = vmatprep.subr.bf16.mxu1 %v1216_v6  ;;  %v1249_v31 = vld [vmem:[%s1580_s6 + $0x70] ss:$8 sps:$4 sm:$0xff]   ;;  %v1609_v35 = vld [vmem:[%s1695_s2] ss:$0 sm:$0xff] }
  0x69   : > { %1058 = vmatpush3.bf16.msra.mxu0 %v1217_v7  ;;  %1126 = vmatpush3.bf16.msra.mxu1 %v1217_v7 }
  0x6a   : > { %1059 = vmatprep.subr.bf16.mxu0 %v1218_v8  ;;  %1119 = vmatprep.subr.bf16.mxu1 %v1218_v8 }
  0x6d   : > { %1060 = vmatpush3.bf16.msra.mxu0 %v1219_v9  ;;  %1127 = vmatpush3.bf16.msra.mxu1 %v1219_v9 }
  0x6e   : > { %1061 = vmatprep.subr.bf16.mxu0 %v1220_v10  ;;  %1120 = vmatprep.subr.bf16.mxu1 %v1220_v10 }
  0x71   : > { %1062 = vmatpush3.bf16.msra.mxu0 %v1221_v13  ;;  %1128 = vmatpush3.bf16.msra.mxu1 %v1221_v13 }
  0x72   : > { %1063 = vmatprep.subr.bf16.mxu0 %v1222_v14  ;;  %1121 = vmatprep.subr.bf16.mxu1 %v1222_v14 }
  0x75   : > { %1064 = vmatpush3.bf16.msra.mxu0 %v1223_v15  ;;  %1129 = vmatpush3.bf16.msra.mxu1 %v1223_v15 }
  0x76   : > { %1065 = vmatprep.subr.bf16.mxu0 %v1224_v16  ;;  %1122 = vmatprep.subr.bf16.mxu1 %v1224_v16 }
  0x79   : > { %1066 = vmatpush3.bf16.msra.mxu0 %v1225_v17  ;;  %1130 = vmatpush3.bf16.msra.mxu1 %v1225_v17 }
  0x7c   : > { %553 = vmatmul.mubr.bf16.vlgmr.msra.gmra.mrb[0].mxu0 %v1226_v18  ;;  %585 = vmatmul.mubr.bf16.vlgmr.msra.gmra.mrb[0].mxu1 %v1229_v19 }
  0x7d   : > { %560 = vmatprep.mubr.bf16.mxu0 %v1232_v20  ;;  %592 = vmatprep.mubr.bf16.mxu1 %v1234_v21 }
  0x84   : > { %561 = vmatmul.mubr.bf16.gmra.mrb[4].mxu0 %v1236_v22  ;;  %593 = vmatmul.mubr.bf16.gmra.mrb[4].mxu1 %v1237_v23 }
  0x85   : > { %568 = vmatprep.mubr.bf16.mxu0 %v1238_v24  ;;  %600 = vmatprep.mubr.bf16.mxu1 %v1240_v25 }
  0x8c   : > { %569 = vmatmul.mubr.bf16.gmra.mrb[8].mxu0 %v1242_v26  ;;  %601 = vmatmul.mubr.bf16.gmra.mrb[8].mxu1 %v1243_v27 }
  0x8d   : > { %576 = vmatprep.mubr.bf16.mxu0 %v1244_v28  ;;  %608 = vmatprep.mubr.bf16.mxu1 %v1246_v29 }
  0x94   : > { %577 = vmatmul.mubr.bf16.gmra.mrb[12].mxu0 %v1248_v30  ;;  %609 = vmatmul.mubr.bf16.gmra.mrb[12].mxu1 %v1249_v31 }
 0x14f   : > { %v1067_v32 = vpop.f32.mrb[0].mxu0  ;;  %v1091_v33 = vpop.f32.mrb[0].mxu1 }
 0x150   : > { %v1068_v34 = vpop.f32.mrb[1].mxu0  ;;  %v1092_v36 = vpop.f32.mrb[1].mxu1 }
 0x151   : > { %v1069_v37 = vadd.f32 %v1068_v34, %v1067_v32  ;;  %v1093_v38 = vadd.f32 %v1092_v36, %v1091_v33  ;;  %v1070_v39 = vpop.f32.mrb[2].mxu0  ;;  %v1094_v40 = vpop.f32.mrb[2].mxu1 }
 0x152   : > { %v1071_v41 = vpop.f32.mrb[3].mxu0  ;;  %v1095_v42 = vpop.f32.mrb[3].mxu1 }
 0x153   : > { %v675_v43 = vadd.f32 %v1069_v37, %v1609_v35  ;;  %v683_v44 = vadd.f32 %v1093_v38, %v1609_v35  ;;  %v1072_v45 = vadd.f32 %v1071_v41, %v1070_v39  ;;  %v1096_v46 = vadd.f32 %v1095_v42, %v1094_v40 }
 0x155   : > { %v676_v47 = vadd.f32 %v1072_v45, %v1609_v35  ;;  %v684_v48 = vadd.f32 %v1096_v46, %v1609_v35  ;;  %v691_v49 = vmax.f32 %v675_v43, 0.0  ;;  %v699_v50 = vmax.f32 %v683_v44, 0.0 }
 0x157   : > { %v692_v51 = vmax.f32 %v676_v47, 0.0  ;;  %v700_v52 = vmax.f32 %v684_v48, 0.0  ;;  %v1073_v53 = vpop.f32.mrb[4].mxu0  ;;  %v1097_v54 = vpop.f32.mrb[4].mxu1 }
 0x158   : > { %v1074_v55 = vpop.f32.mrb[5].mxu0  ;;  %v1098_v56 = vpop.f32.mrb[5].mxu1 }
 0x159   : > { %v1007_v57 = vpack.c.bf16 %v692_v51, %v691_v49  ;;  %v1027_v58 = vpack.c.bf16 %v700_v52, %v699_v50  ;;  %v1075_v59 = vadd.f32 %v1074_v55, %v1073_v53  ;;  %v1099_v60 = vadd.f32 %v1098_v56, %v1097_v54  ;;  %v1076_v61 = vpop.f32.mrb[6].mxu0  ;;  %v1100_v62 = vpop.f32.mrb[6].mxu1 }
 0x15a   : > { %v1077_v63 = vpop.f32.mrb[7].mxu0  ;;  %v1101_v0 = vpop.f32.mrb[7].mxu1 }
 0x15b   : > { %1008 = vst [vmem:[%s1616_s9] sm:$0xff] %v1007_v57   ;;  %1047 = vst [vmem:[%s1616_s9 + $0x20] sm:$0xff] %v1027_v58   ;;  %v677_v1 = vadd.f32 %v1075_v59, %v1609_v35  ;;  %v685_v2 = vadd.f32 %v1099_v60, %v1609_v35  ;;  %v1078_v3 = vadd.f32 %v1077_v63, %v1076_v61 }
 0x15c   : > { %v1102_v4 = vadd.f32 %v1101_v0, %v1100_v62 }
 0x15d   : > { %v678_v5 = vadd.f32 %v1078_v3, %v1609_v35  ;;  %v693_v7 = vmax.f32 %v677_v1, 0.0  ;;  %v701_v8 = vmax.f32 %v685_v2, 0.0 }
 0x15e   : > { %v686_v6 = vadd.f32 %v1102_v4, %v1609_v35 }
 0x15f   : > { %v694_v9 = vmax.f32 %v678_v5, 0.0  ;;  %v1079_v11 = vpop.f32.mrb[8].mxu0  ;;  %v1103_v12 = vpop.f32.mrb[8].mxu1 }
 0x160   : > { %v702_v10 = vmax.f32 %v686_v6, 0.0  ;;  %v1080_v13 = vpop.f32.mrb[9].mxu0  ;;  %v1104_v14 = vpop.f32.mrb[9].mxu1 }
 0x161   : > { %v1012_v15 = vpack.c.bf16 %v694_v9, %v693_v7  ;;  %v1081_v17 = vadd.f32 %v1080_v13, %v1079_v11  ;;  %v1105_v18 = vadd.f32 %v1104_v14, %v1103_v12  ;;  %v1082_v19 = vpop.f32.mrb[10].mxu0  ;;  %v1106_v20 = vpop.f32.mrb[10].mxu1 }
 0x162   : > { %v1032_v16 = vpack.c.bf16 %v702_v10, %v701_v8  ;;  %v1083_v21 = vpop.f32.mrb[11].mxu0  ;;  %v1107_v22 = vpop.f32.mrb[11].mxu1 }
 0x163   : > { %1044 = vst [vmem:[%s1616_s9 + $0x8] sm:$0xff] %v1012_v15   ;;  %v679_v23 = vadd.f32 %v1081_v17, %v1609_v35  ;;  %v687_v24 = vadd.f32 %v1105_v18, %v1609_v35  ;;  %v1084_v25 = vadd.f32 %v1083_v21, %v1082_v19  ;;  %v1108_v26 = vadd.f32 %v1107_v22, %v1106_v20 }
 0x164   : > { %1048 = vst [vmem:[%s1616_s9 + $0x28] sm:$0xff] %v1032_v16  }
 0x165   : > { %v680_v27 = vadd.f32 %v1084_v25, %v1609_v35  ;;  %v688_v28 = vadd.f32 %v1108_v26, %v1609_v35  ;;  %v695_v29 = vmax.f32 %v679_v23, 0.0  ;;  %v703_v30 = vmax.f32 %v687_v24, 0.0 }
 0x167   : > { %v696_v31 = vmax.f32 %v680_v27, 0.0  ;;  %v704_v32 = vmax.f32 %v688_v28, 0.0  ;;  %v1085_v33 = vpop.f32.mrb[12].mxu0  ;;  %v1109_v34 = vpop.f32.mrb[12].mxu1 }
 0x168   : > { %v1086_v36 = vpop.f32.mrb[13].mxu0  ;;  %v1110_v37 = vpop.f32.mrb[13].mxu1 }
 0x169   : > { %v1017_v38 = vpack.c.bf16 %v696_v31, %v695_v29  ;;  %v1037_v39 = vpack.c.bf16 %v704_v32, %v703_v30  ;;  %v1087_v40 = vadd.f32 %v1086_v36, %v1085_v33  ;;  %v1111_v41 = vadd.f32 %v1110_v37, %v1109_v34  ;;  %v1088_v42 = vpop.f32.mrb[14].mxu0  ;;  %v1112_v43 = vpop.f32.mrb[14].mxu1 }
 0x16a   : > { %v1089_v44 = vpop.f32.mrb[15].mxu0  ;;  %v1113_v45 = vpop.f32.mrb[15].mxu1 }
 0x16b   : > { %1045 = vst [vmem:[%s1616_s9 + $0x10] sm:$0xff] %v1017_v38   ;;  %1049 = vst [vmem:[%s1616_s9 + $0x30] sm:$0xff] %v1037_v39   ;;  %v681_v46 = vadd.f32 %v1087_v40, %v1609_v35  ;;  %v689_v47 = vadd.f32 %v1111_v41, %v1609_v35  ;;  %v1090_v48 = vadd.f32 %v1089_v44, %v1088_v42 }
 0x16c   : > { %v1114_v49 = vadd.f32 %v1113_v45, %v1112_v43 }
 0x16d   : > { %v682_v50 = vadd.f32 %v1090_v48, %v1609_v35  ;;  %v697_v52 = vmax.f32 %v681_v46, 0.0  ;;  %v705_v53 = vmax.f32 %v689_v47, 0.0 }
 0x16e   : > { %v690_v51 = vadd.f32 %v1114_v49, %v1609_v35 }
 0x16f   : > { %v698_v54 = vmax.f32 %v682_v50, 0.0 }
 0x170   : > { %v706_v55 = vmax.f32 %v690_v51, 0.0 }
 0x171   : > { %v1022_v56 = vpack.c.bf16 %v698_v54, %v697_v52 }
 0x172   : > { %v1042_v57 = vpack.c.bf16 %v706_v55, %v705_v53 }
 0x173   : > { %1046 = vst [vmem:[%s1616_s9 + $0x18] sm:$0xff] %v1022_v56  }
 0x174   : > { %1050 = vst [vmem:[%s1616_s9 + $0x38] sm:$0xff] %v1042_v57  }
 0x175   : > { %1321 = shalt.err (!%p1318_p5)
}
 0x176   : > { %s1322_s29 = scalar_lea.hbm %s1641_s7, 1024  ;;  %s1326_s20 = scalar_lea.hbm %s1696_s3, 8192 }
 0x177   : > { %p1323_p9 = scmp.ne.s32.totalorder %s1641_s7, %s1322_s29  ;;  %p1327_p3 = scmp.lt.u32.totalorder %s1641_s7, %s1696_s3 }
 0x178   : > { %p1328_p7 = scmp.lt.u32.totalorder %s1326_s20, %s1322_s29  ;;  %p1330_p4 = scmp.lt.u32.totalorder %s1322_s29, %s1641_s7 }
 0x179   : > { %p1324_p1 = pnand %p1323_p9, %p1520_p11 }
 0x17a   : > { %p1329_p13 = por %p1328_p7, %p1327_p3 }
 0x17b   : > { %p1325_p2 = pneg %p1324_p1 }
 0x17c   : > { %p1331_p6 = por %p1330_p4, %p1329_p13 }
 0x17e   : > { %p1332_p8 = pnand %p1331_p6, %p1325_p2 }
 0x180   : > { %1335 = shalt.err (!%p1332_p8)
}
 0x181   : > { %s1403_s9 = smov 64   ;;  %s1404_s10 = smov 4  }
 0x182   : > { %1137 = dma.vmem_to_hbm [thread:$0]  (%p1520_p11), %s1643_s11, 1024, %s1641_s7, %s788_s15, %s1403_s9, %s1403_s9, %s1404_s10  }
 0x183 PF: > { %p1154_p12 = scmp.ge.s32.totalorder %s1394_s17, 2  ;;  %s817_s18 = sand.u32 1, %s1374_s12  }
 0x184   : > { %p1714_p10 = scmp.ne.s32.totalorder %s1704_s23, 0  ;;  %s818_s26 = scalar_lea.sflag [#allocation5], %s817_s18 }
 0x186   : > { %p1148_p0 = pnand %p1154_p12, %p1714_p10 }
 0x188   : > { %1369 = dma.done.wait (!%p1148_p0), %s818_s26, 1024  }
 0x189   : > { %1371 = vsyncadd (!%p1148_p0), %s818_s26, 4294966272  ;;  %s20_s17 = sadd.s32 1, %s1394_s17   ;;  %s1715_s12 = smov %s1378_s13 }
 0x18a   : > { %p17_p5 = scmp.ge.s32.totalorder %s20_s17, 10   ;;  %s1716_s13 = smov %s1382_s14 }
 0x18b   : > { %s1717_s14 = smov %s1529_s5  ;;  %s1718_s15 = smov %s1390_s16 }
 0x18c   : > { %s1719_s16 = smov %s1721_s28  ;;  %19 = sbr.rel (!%p17_p5) target bundleno = 7 (0x7), region = 93 }
 0x193   :  { %823 = vsyncpa [#allocation4], 1 }
 0x194   :  { %825 = vsyncpa [#allocation4 + $0x1], 1 }
 0x195   :  { %826 = vsyncpa [#allocation7], 1 }
 0x196   :  { %827 = vsyncpa [#allocation5], 1 }
 0x197   :  { %829 = vsyncpa [#allocation5 + $0x1], 1 }

</bundles_post_ra>
